<compile_context>
chip_gen: v6e
topology: v6e:2x2x1
jax: 0.10.0
libtpu: 0.0.40
codegen_flags: <defaults>
</compile_context>

<pallas_src>
import functools

import jax
import jax.numpy as jnp
import numpy as np
from jax.experimental import pallas as pl
from jax.experimental.pallas import tpu as pltpu

EPS = 1e-5  # torch BatchNorm1d default eps


# --------------------------------------------------------------------------
# Pallas kernel: one grid step == one full forward of a (B, ...) batch.
# All weights live in a single packed VMEM buffer; every access is a static,
# 8-row / 128-lane aligned slice (zero-cost view).
# --------------------------------------------------------------------------
def _cnn_kernel(x_case_ref, xp_ref, t_ref, w_ref, out_ref, *, lay):
    xc = x_case_ref[0]            # (B, n_case)
    xp = xp_ref[0]                # (B, n_xp)  channel-major flattened x_process
    tt = t_ref[0]                 # (B, L)

    C1, C2, CD, CL, CO = lay["C1"], lay["C2"], lay["CD"], lay["CL"], lay["CO"]
    f32 = jnp.float32

    def wslab(name, rows, cols):
        s = lay[name]
        return w_ref[s:s + rows, 0:cols]          # static, tile-aligned view

    # conv0 + folded BN + ReLU: one banded matmul per input group, accumulated
    # (x_process rows and the t rows of the Toeplitz matrix are kept separate
    #  so no channel-concat / NCL->NLC transpose is ever needed).
    h1 = jnp.dot(xp, wslab("w0a", lay["n_xp"], C1), preferred_element_type=f32)
    h1 = h1 + jnp.dot(tt, wslab("w0b", lay["n_t"], C1), preferred_element_type=f32)
    h1 = jnp.maximum(h1 + wslab("b0", 1, C1), 0.0)

    # conv1 + folded BN + ReLU (input already channel-major-flat, lane-padded)
    h2 = jnp.dot(h1, wslab("w1", C1, C2), preferred_element_type=f32)
    h2 = jnp.maximum(h2 + wslab("b1", 1, C2), 0.0)

    # dense0: accumulated dots (x_case part + conv part), no lane concat
    hd = jnp.dot(xc, wslab("wd_case", lay["n_case"], CD), preferred_element_type=f32)
    hd = hd + jnp.dot(h2, wslab("wd_conv", C2, CD), preferred_element_type=f32)
    hd = jnp.maximum(hd + wslab("bd", 1, CD), 0.0)

    # last layer
    lt = jnp.dot(hd, wslab("wl", CD, CL), preferred_element_type=f32)
    lt = jnp.maximum(lt + wslab("bl", 1, CL), 0.0)

    # fused [mean | logvar] head, zero-padded to a lane-dense (B, CO) output
    out = jnp.dot(lt, wslab("wml", CL, CO), preferred_element_type=f32)
    out_ref[0] = out + wslab("bml", 1, CO)


# --------------------------------------------------------------------------
# One-time parameter preparation (hoisted completely out of the hot path):
#   - fold eval-mode BN + conv bias into the conv weights
#   - expand each conv into a banded (Toeplitz) matrix, channel-major on both
#     sides so the post-conv flatten matches torch's .view for free
#   - split conv0's rows into the x_process part and the t part (folds the
#     channel concat into the weights)
#   - split dense0 into x_case / conv parts, fuse mean+logvar heads
#   - zero-pad everything to lane-dense widths and pack into ONE buffer
# --------------------------------------------------------------------------
def _round_up(x, m):
    return ((x + m - 1) // m) * m


def _conv_toeplitz(w_scaled, L_in):
    """(C_out, C_in, k) conv weight -> (C_in*L_in, C_out*L_out) banded matrix,
    channel-major flatten on both input and output (matches torch .view)."""
    C_out, C_in, k = w_scaled.shape
    L_out = L_in - k + 1
    T = np.zeros((C_in, L_in, C_out, L_out), np.float32)
    for l in range(L_out):
        for j in range(k):
            T[:, l + j, :, l] += w_scaled[:, :, j].T
    return T.reshape(C_in * L_in, C_out * L_out)


def prepare_params(params, input_size_case, length):
    to_np = lambda a: np.asarray(a, dtype=np.float32)

    def fold_conv(pack):
        w, b, g, be, m, v = map(to_np, pack)          # w: (C_out, C_in, k)
        scale = g / np.sqrt(v + EPS)
        return w * scale[:, None, None], (b - m) * scale + be

    w0, b0 = fold_conv(params["conv0"])
    w1, b1 = fold_conv(params["conv1"])
    C_out, C_in0, k = w0.shape
    L = int(length)
    L1 = L - k + 1
    L2 = L1 - k + 1

    wd, bd = map(to_np, params["dense0"])              # (D, lin_in), (D,)
    wl, bl = map(to_np, params["last"])                # (10, D), (10,)
    wm, bm = map(to_np, params["mean"])                # (n_out, 10)
    wlv, blv = map(to_np, params["logvar"])            # (1, 10)
    D = wd.shape[0]
    n_last = wl.shape[0]
    n_out = wm.shape[0]

    # lane-dense activation widths (multiples of 128)
    C1 = _round_up(C_out * L1, 128)
    C2 = _round_up(C_out * L2, 128)
    CD = _round_up(D, 128)
    CL = _round_up(n_last, 128)
    CO = _round_up(n_out + 1, 128)
    WPACK = max(C1, C2, CD, CL, CO)

    # banded conv matrices (whole conv == one matmul)
    T0 = _conv_toeplitz(w0, L)                          # (C_in0*L, C_out*L1)
    T1 = _conv_toeplitz(w1, L1)                         # (C_out*L1, C_out*L2)
    n_xp = (C_in0 - 1) * L                              # x_process rows
    w0a = T0[:n_xp, :]                                  # x_process channels
    w0b = T0[n_xp:, :]                                  # t channel
    b0_flat = np.repeat(b0, L1)[None, :]                # (1, C_out*L1)
    w1_full = np.zeros((C1, C_out * L2), np.float32)    # consume padded h1
    w1_full[: C_out * L1, :] = T1
    b1_flat = np.repeat(b1, L2)[None, :]

    # dense0 split (accumulated dots, no concat); flatten order already matches
    wd_case = wd[:, :input_size_case].T                 # (n_case, D)
    wd_conv = np.zeros((C2, D), np.float32)
    wd_conv[: C_out * L2, :] = wd[:, input_size_case:].T
    wl_full = np.zeros((CD, n_last), np.float32)
    wl_full[:D, :] = wl.T
    wml = np.zeros((CL, n_out + 1), np.float32)
    wml[:n_last, :n_out] = wm.T
    wml[:n_last, n_out:] = wlv.T
    bml = np.concatenate([bm, blv])[None, :]

    # ---- pack everything into ONE lane-padded, 8-row-aligned buffer ----
    chunks, layout = [], {}
    off = 0

    def add(name, mat):
        nonlocal off
        r, c = mat.shape
        r8 = _round_up(max(r, 1), 8)
        buf = np.zeros((r8, WPACK), np.float32)
        buf[:r, :c] = mat
        chunks.append(buf)
        layout[name] = off
        off += r8

    add("w0a", w0a)
    add("w0b", w0b)
    add("b0", b0_flat)
    add("w1", w1_full)
    add("b1", b1_flat)
    add("wd_case", wd_case)
    add("wd_conv", wd_conv)
    add("bd", bd[None, :])
    add("wl", wl_full)
    add("bl", bl[None, :])
    add("wml", wml)
    add("bml", bml)

    wpack = jnp.asarray(np.concatenate(chunks, axis=0))
    layout.update(n_xp=n_xp, n_t=L, n_case=int(input_size_case),
                  C1=C1, C2=C2, CD=CD, CL=CL, CO=CO)
    return {"wpack": wpack, "layout": layout, "n_outputs": int(n_out)}


# --------------------------------------------------------------------------
# Wrappers.  The batched version runs N forward steps in one pallas_call with
# the packed weights VMEM-resident across the grid.
# --------------------------------------------------------------------------
def cnn_forward_batched(x_case, x_process, t, prepped):
    """x_case: (N,B,n_case), x_process: (N,B,C_p,L), t: (N,B,L)."""
    N, B = x_case.shape[:2]
    L = t.shape[-1]
    lay = prepped["layout"]
    wpack = prepped["wpack"]
    n_out = prepped["n_outputs"]
    CO = lay["CO"]

    xp = x_process.reshape(N, B, -1)      # contiguous merge -> metadata only

    out = pl.pallas_call(
        functools.partial(_cnn_kernel, lay=lay),
        out_shape=jax.ShapeDtypeStruct((N, B, CO), jnp.float32),
        grid=(N,),
        in_specs=[
            pl.BlockSpec((1, B, x_case.shape[-1]), lambda i: (i, 0, 0)),
            pl.BlockSpec((1, B, xp.shape[-1]), lambda i: (i, 0, 0)),
            pl.BlockSpec((1, B, L), lambda i: (i, 0, 0)),
            # weights: index_map always block (0,0) -> DMA'd once, VMEM-resident
            pl.BlockSpec(wpack.shape, lambda i: (0, 0)),
        ],
        out_specs=pl.BlockSpec((1, B, CO), lambda i: (i, 0, 0)),
        compiler_params=pltpu.CompilerParams(
            dimension_semantics=("parallel",)),   # v7x: split steps over 2 TCs
    )(x_case, xp, t, wpack)
    return out[..., :n_out], out[..., n_out:n_out + 1]


def cnn_forward(x_case, x_process, t, prepped):
    """Single forward step (B, ...) -> (mean (B,n_out), logvar (B,1))."""
    mean, logvar = cnn_forward_batched(x_case[None], x_process[None], t[None],
                                       prepped)
    return mean[0], logvar[0]


# --------------------------------------------------------------------------
# Pure-JAX reference in the original PyTorch NCL layout (for validation)
# --------------------------------------------------------------------------
def reference_forward(x_case, x_process, t, params):
    B, _, L = x_process.shape
    x = jnp.concatenate([x_process, t.reshape(B, 1, L)], axis=1)  # (B, C, L)

    def conv_bn_relu(x, pack):
        w, b, g, be, m, v = pack  # w: (C_out, C_in, k)
        cout, _, k = w.shape
        L_in = x.shape[2]
        L_out = L_in - k + 1
        out = jnp.zeros((B, cout, L_out), jnp.float32)
        for j in range(k):
            out = out + jnp.einsum("bcl,oc->bol", x[:, :, j:j + L_out], w[:, :, j])
        out = out + b[None, :, None]
        out = ((out - m[None, :, None]) * jax.lax.rsqrt(v[None, :, None] + EPS)
               * g[None, :, None] + be[None, :, None])
        return jnp.maximum(out, 0.0)

    x = conv_bn_relu(x, params["conv0"])
    x = conv_bn_relu(x, params["conv1"])
    x = x.reshape(B, -1)                      # torch .view: channel-major flatten
    xc = jnp.concatenate([x_case, x], axis=1)

    wd, bd = params["dense0"]
    h = jnp.maximum(xc @ wd.T + bd, 0.0)
    wl, bl = params["last"]
    last = jnp.maximum(h @ wl.T + bl, 0.0)
    wm, bm = params["mean"]
    wlv, blv = params["logvar"]
    return last @ wm.T + bm, last @ wlv.T + blv


# --------------------------------------------------------------------------
# Deterministic parameter init (torch-layout shapes)
# --------------------------------------------------------------------------
def init_params(key, input_size_case, input_size_process, length,
                nr_out_channels, kernel_size, dense_width, nr_outputs):
    keys = jax.random.split(key, 24)
    cin0 = input_size_process + 1
    L1 = length - kernel_size + 1
    L2 = L1 - kernel_size + 1
    lin_in = input_size_case + nr_out_channels * L2

    def w(k_, shape, scale=0.1):
        return (scale * jax.random.normal(k_, shape)).astype(jnp.float32)

    def bn_pack(ks, c):
        gamma = (1.0 + 0.1 * jax.random.normal(ks[0], (c,))).astype(jnp.float32)
        beta = w(ks[1], (c,))
        rmean = w(ks[2], (c,))
        rvar = (0.5 + jax.random.uniform(ks[3], (c,))).astype(jnp.float32)
        return gamma, beta, rmean, rvar

    params = {
        "conv0": (w(keys[0], (nr_out_channels, cin0, kernel_size)),
                  w(keys[1], (nr_out_channels,)),
                  *bn_pack(keys[2:6], nr_out_channels)),
        "conv1": (w(keys[6], (nr_out_channels, nr_out_channels, kernel_size)),
                  w(keys[7], (nr_out_channels,)),
                  *bn_pack(keys[8:12], nr_out_channels)),
        "dense0": (w(keys[12], (dense_width, lin_in)), w(keys[13], (dense_width,))),
        "last": (w(keys[14], (10, dense_width)), w(keys[15], (10,))),
        "mean": (w(keys[16], (nr_outputs, 10)), w(keys[17], (nr_outputs,))),
        "logvar": (w(keys[18], (1, 10)), w(keys[19], (1,))),
    }
    return params


if __name__ == "__main__":
    # Small shapes consistent with the module constructor.
    B = 8
    input_size_case = 4
    input_size_process = 3
    length = 16
    nr_out_channels = 16
    kernel_size = 2
    stride = 1            # kernel assumes the default stride of 1
    dense_width = 32
    nr_outputs = 1
    N_STEPS = 4           # batched-call path: N forwards in one pallas_call
    assert stride == 1

    root = jax.random.PRNGKey(0)
    kp, kc, kx, kt = jax.random.split(root, 4)
    params = init_params(kp, input_size_case, input_size_process, length,
                         nr_out_channels, kernel_size, dense_width, nr_outputs)

    # One-time parameter preparation, hoisted out of the per-call path.
    prepped = prepare_params(params, input_size_case, length)

    x_case = jax.random.normal(kc, (N_STEPS, B, input_size_case), jnp.float32)
    x_process = jax.random.normal(
        kx, (N_STEPS, B, input_size_process, length), jnp.float32)
    t = jax.random.normal(kt, (N_STEPS, B, length), jnp.float32)

    # Single-call path.
    fwd = jax.jit(lambda a, b, c: cnn_forward(a, b, c, prepped))
    mean0, logvar0 = fwd(x_case[0], x_process[0], t[0])
    jax.block_until_ready((mean0, logvar0))

    # Batched path: weights DMA'd once and kept VMEM-resident across the grid.
    fwd_b = jax.jit(lambda a, b, c: cnn_forward_batched(a, b, c, prepped))
    mean_b, logvar_b = fwd_b(x_case, x_process, t)
    jax.block_until_ready((mean_b, logvar_b))

    assert mean0.shape == (B, nr_outputs) and logvar0.shape == (B, 1)
    assert mean_b.shape == (N_STEPS, B, nr_outputs)
    assert logvar_b.shape == (N_STEPS, B, 1)

    for s in range(N_STEPS):
        ref_mean, ref_logvar = reference_forward(x_case[s], x_process[s], t[s],
                                                 params)
        assert jnp.allclose(mean_b[s], ref_mean, atol=1e-3, rtol=1e-3)
        assert jnp.allclose(logvar_b[s], ref_logvar, atol=1e-3, rtol=1e-3)
    assert jnp.allclose(mean0, mean_b[0], atol=1e-5, rtol=1e-5)
    assert jnp.allclose(logvar0, logvar_b[0], atol=1e-5, rtol=1e-5)

    print("KERNEL_OK")
</pallas_src>

<mosaic_0001>
module attributes {stable_mosaic.version = 11 : i64} {
  func.func @_cnn_kernel(%arg0: i32, %arg1: memref<1x8x4xf32, #tpu.memory_space<vmem>>, %arg2: memref<1x8x48xf32, #tpu.memory_space<vmem>>, %arg3: memref<1x8x16xf32, #tpu.memory_space<vmem>>, %arg4: memref<880x256xf32, #tpu.memory_space<vmem>>, %arg5: memref<1x8x128xf32, #tpu.memory_space<vmem>>) attributes {dimension_semantics = [#tpu.dimension_semantics<parallel>], iteration_bounds = array<i64: 1>, scalar_prefetch = 0 : i64, scratch_operands = 0 : i64, tpu.core_type = #tpu.core_type<tc>, window_params = [{transform_indices = @transform_0, window_bounds = array<i64: 1, 8, 4>}, {transform_indices = @transform_1, window_bounds = array<i64: 1, 8, 48>}, {transform_indices = @transform_2, window_bounds = array<i64: 1, 8, 16>}, {pipeline_mode = #tpu.pipeline_mode<synchronous>, transform_indices = @transform_3, window_bounds = array<i64: 880, 256>}, {transform_indices = @transform_4, window_bounds = array<i64: 1, 8, 128>}]} {
    %c0 = arith.constant 0 : index
    %c0_0 = arith.constant 0 : index
    %c0_1 = arith.constant 0 : index
    %0 = vector.load %arg1[%c0, %c0_0, %c0_1] : memref<1x8x4xf32, #tpu.memory_space<vmem>>, vector<1x8x4xf32>
    %1 = vector.shape_cast %0 : vector<1x8x4xf32> to vector<8x4xf32>
    %c0_2 = arith.constant 0 : index
    %c0_3 = arith.constant 0 : index
    %c0_4 = arith.constant 0 : index
    %2 = vector.load %arg2[%c0_2, %c0_3, %c0_4] : memref<1x8x48xf32, #tpu.memory_space<vmem>>, vector<1x8x48xf32>
    %3 = vector.shape_cast %2 : vector<1x8x48xf32> to vector<8x48xf32>
    %c0_5 = arith.constant 0 : index
    %c0_6 = arith.constant 0 : index
    %c0_7 = arith.constant 0 : index
    %4 = vector.load %arg3[%c0_5, %c0_6, %c0_7] : memref<1x8x16xf32, #tpu.memory_space<vmem>>, vector<1x8x16xf32>
    %5 = vector.shape_cast %4 : vector<1x8x16xf32> to vector<8x16xf32>
    %c0_8 = arith.constant 0 : index
    %c0_9 = arith.constant 0 : index
    %6 = vector.load %arg4[%c0_8, %c0_9] : memref<880x256xf32, #tpu.memory_space<vmem>>, vector<48x256xf32>
    %cst = arith.constant dense<0.000000e+00> : vector<8x256xf32>
    %7 = tpu.matmul %3, %6, %cst {dimension_numbers = #tpu.dot_dimension_numbers<[1], [0], [0], [1], [0, 0, 1, 1], [], []>} : vector<8x48xf32>, vector<48x256xf32>, vector<8x256xf32> -> vector<8x256xf32>
    %c48 = arith.constant 48 : index
    %c0_10 = arith.constant 0 : index
    %8 = vector.load %arg4[%c48, %c0_10] : memref<880x256xf32, #tpu.memory_space<vmem>>, vector<16x256xf32>
    %cst_11 = arith.constant dense<0.000000e+00> : vector<8x256xf32>
    %9 = tpu.matmul %5, %8, %cst_11 {dimension_numbers = #tpu.dot_dimension_numbers<[1], [0], [0], [1], [0, 0, 1, 1], [], []>} : vector<8x16xf32>, vector<16x256xf32>, vector<8x256xf32> -> vector<8x256xf32>
    %10 = arith.addf %7, %9 : vector<8x256xf32>
    %c64 = arith.constant 64 : index
    %c0_12 = arith.constant 0 : index
    %11 = vector.load %arg4[%c64, %c0_12] : memref<880x256xf32, #tpu.memory_space<vmem>>, vector<1x256xf32>
    %12 = vector.broadcast %11 : vector<1x256xf32> to vector<8x256xf32>
    %13 = arith.addf %10, %12 : vector<8x256xf32>
    %cst_13 = arith.constant 0.000000e+00 : f32
    %14 = vector.broadcast %cst_13 : f32 to vector<8x256xf32>
    %15 = arith.maximumf %13, %14 : vector<8x256xf32>
    %c72 = arith.constant 72 : index
    %c0_14 = arith.constant 0 : index
    %16 = vector.load %arg4[%c72, %c0_14] : memref<880x256xf32, #tpu.memory_space<vmem>>, vector<256x256xf32>
    %cst_15 = arith.constant dense<0.000000e+00> : vector<8x256xf32>
    %17 = tpu.matmul %15, %16, %cst_15 {dimension_numbers = #tpu.dot_dimension_numbers<[1], [0], [0], [1], [0, 0, 1, 1], [], []>} : vector<8x256xf32>, vector<256x256xf32>, vector<8x256xf32> -> vector<8x256xf32>
    %c328 = arith.constant 328 : index
    %c0_16 = arith.constant 0 : index
    %18 = vector.load %arg4[%c328, %c0_16] : memref<880x256xf32, #tpu.memory_space<vmem>>, vector<1x256xf32>
    %19 = vector.broadcast %18 : vector<1x256xf32> to vector<8x256xf32>
    %20 = arith.addf %17, %19 : vector<8x256xf32>
    %cst_17 = arith.constant 0.000000e+00 : f32
    %21 = vector.broadcast %cst_17 : f32 to vector<8x256xf32>
    %22 = arith.maximumf %20, %21 : vector<8x256xf32>
    %c336 = arith.constant 336 : index
    %c0_18 = arith.constant 0 : index
    %23 = vector.load %arg4[%c336, %c0_18] : memref<880x256xf32, #tpu.memory_space<vmem>>, vector<4x128xf32>
    %cst_19 = arith.constant dense<0.000000e+00> : vector<8x128xf32>
    %24 = tpu.matmul %1, %23, %cst_19 {dimension_numbers = #tpu.dot_dimension_numbers<[1], [0], [0], [1], [0, 0, 1, 1], [], []>} : vector<8x4xf32>, vector<4x128xf32>, vector<8x128xf32> -> vector<8x128xf32>
    %c344 = arith.constant 344 : index
    %c0_20 = arith.constant 0 : index
    %25 = vector.load %arg4[%c344, %c0_20] : memref<880x256xf32, #tpu.memory_space<vmem>>, vector<256x128xf32>
    %cst_21 = arith.constant dense<0.000000e+00> : vector<8x128xf32>
    %26 = tpu.matmul %22, %25, %cst_21 {dimension_numbers = #tpu.dot_dimension_numbers<[1], [0], [0], [1], [0, 0, 1, 1], [], []>} : vector<8x256xf32>, vector<256x128xf32>, vector<8x128xf32> -> vector<8x128xf32>
    %27 = arith.addf %24, %26 : vector<8x128xf32>
    %c600 = arith.constant 600 : index
    %c0_22 = arith.constant 0 : index
    %28 = vector.load %arg4[%c600, %c0_22] : memref<880x256xf32, #tpu.memory_space<vmem>>, vector<1x128xf32>
    %29 = vector.broadcast %28 : vector<1x128xf32> to vector<8x128xf32>
    %30 = arith.addf %27, %29 : vector<8x128xf32>
    %cst_23 = arith.constant 0.000000e+00 : f32
    %31 = vector.broadcast %cst_23 : f32 to vector<8x128xf32>
    %32 = arith.maximumf %30, %31 : vector<8x128xf32>
    %c608 = arith.constant 608 : index
    %c0_24 = arith.constant 0 : index
    %33 = vector.load %arg4[%c608, %c0_24] : memref<880x256xf32, #tpu.memory_space<vmem>>, vector<128x128xf32>
    %cst_25 = arith.constant dense<0.000000e+00> : vector<8x128xf32>
    %34 = tpu.matmul %32, %33, %cst_25 {dimension_numbers = #tpu.dot_dimension_numbers<[1], [0], [0], [1], [0, 0, 1, 1], [], []>} : vector<8x128xf32>, vector<128x128xf32>, vector<8x128xf32> -> vector<8x128xf32>
    %c736 = arith.constant 736 : index
    %c0_26 = arith.constant 0 : index
    %35 = vector.load %arg4[%c736, %c0_26] : memref<880x256xf32, #tpu.memory_space<vmem>>, vector<1x128xf32>
    %36 = vector.broadcast %35 : vector<1x128xf32> to vector<8x128xf32>
    %37 = arith.addf %34, %36 : vector<8x128xf32>
    %cst_27 = arith.constant 0.000000e+00 : f32
    %38 = vector.broadcast %cst_27 : f32 to vector<8x128xf32>
    %39 = arith.maximumf %37, %38 : vector<8x128xf32>
    %c744 = arith.constant 744 : index
    %c0_28 = arith.constant 0 : index
    %40 = vector.load %arg4[%c744, %c0_28] : memref<880x256xf32, #tpu.memory_space<vmem>>, vector<128x128xf32>
    %cst_29 = arith.constant dense<0.000000e+00> : vector<8x128xf32>
    %41 = tpu.matmul %39, %40, %cst_29 {dimension_numbers = #tpu.dot_dimension_numbers<[1], [0], [0], [1], [0, 0, 1, 1], [], []>} : vector<8x128xf32>, vector<128x128xf32>, vector<8x128xf32> -> vector<8x128xf32>
    %c872 = arith.constant 872 : index
    %c0_30 = arith.constant 0 : index
    %42 = vector.load %arg4[%c872, %c0_30] : memref<880x256xf32, #tpu.memory_space<vmem>>, vector<1x128xf32>
    %43 = vector.broadcast %42 : vector<1x128xf32> to vector<8x128xf32>
    %44 = arith.addf %41, %43 : vector<8x128xf32>
    %c0_31 = arith.constant 0 : index
    %c0_32 = arith.constant 0 : index
    %c0_33 = arith.constant 0 : index
    %45 = vector.load %arg5[%c0_31, %c0_32, %c0_33] : memref<1x8x128xf32, #tpu.memory_space<vmem>>, vector<1x8x128xf32>
    %46 = vector.shape_cast %45 : vector<1x8x128xf32> to vector<8x128xf32>
    %47 = vector.shape_cast %44 : vector<8x128xf32> to vector<1x8x128xf32>
    tpu.vector_store %arg5[%c0_31, %c0_32, %c0_33], %47 {strides = array<i32>} : memref<1x8x128xf32, #tpu.memory_space<vmem>>, vector<1x8x128xf32>,
    return
  }
  func.func @transform_0(%arg0: i32) -> (i32, i32, i32) {
    %c0_i32 = arith.constant 0 : i32
    %c0_i32_0 = arith.constant 0 : i32
    %c0_i32_1 = arith.constant 0 : i32
    return %arg0, %c0_i32, %c0_i32_0 : i32, i32, i32
  }
  func.func @transform_1(%arg0: i32) -> (i32, i32, i32) {
    %c0_i32 = arith.constant 0 : i32
    %c0_i32_0 = arith.constant 0 : i32
    %c0_i32_1 = arith.constant 0 : i32
    return %arg0, %c0_i32, %c0_i32_0 : i32, i32, i32
  }
  func.func @transform_2(%arg0: i32) -> (i32, i32, i32) {
    %c0_i32 = arith.constant 0 : i32
    %c0_i32_0 = arith.constant 0 : i32
    %c0_i32_1 = arith.constant 0 : i32
    return %arg0, %c0_i32, %c0_i32_0 : i32, i32, i32
  }
  func.func @transform_3(%arg0: i32) -> (i32, i32) {
    %c0_i32 = arith.constant 0 : i32
    %c0_i32_0 = arith.constant 0 : i32
    %c0_i32_1 = arith.constant 0 : i32
    return %c0_i32, %c0_i32_0 : i32, i32
  }
  func.func @transform_4(%arg0: i32) -> (i32, i32, i32) {
    %c0_i32 = arith.constant 0 : i32
    %c0_i32_0 = arith.constant 0 : i32
    %c0_i32_1 = arith.constant 0 : i32
    return %arg0, %c0_i32, %c0_i32_0 : i32, i32, i32
  }
}

</mosaic_0001>

<bundles_post_ra>
// kernel: _lambda_.1
= control target key start
LH: loop header
LB: loop body
LE: loop exit
PB: predicated region body
PF: predicated region fallthrough
CT: control target
= control target key end

     0   :  { %9 = vsyncpa [#allocation3], 0  ;;  %s909_s15 = smov [#allocation2]   ;;  %s995_s0 = inlined_call_operand.vmem [shape: f32[1,8,4], index: 0, kind: input, shape index: {}]   ;;  %s996_s1 = inlined_call_operand.vmem [shape: f32[1,8,48], index: 1, kind: input, shape index: {}]   ;;  %s997_s2 = inlined_call_operand.vmem [shape: f32[1,8,16], index: 2, kind: input, shape index: {}]   ;;  %s998_s3 = inlined_call_operand.hbm [shape: f32[880,256], index: 3, kind: input, shape index: {}]   ;;  %s999_s4 = inlined_call_operand.vmem [shape: f32[1,8,128], index: 4, kind: output, shape index: {}]  }
   0x1   :  { %s21_s16 = sshll.u32 %s909_s15, 4  ;;  %s22_s16 = int_to_ptr.vmem [resolvable:$true] %s21_s16 }
   0x2   :  { %s895_s17 = scalar_lea.vmem %s22_s16, 28160  ;;  %p900_p1 = scmp.lt.s32.totalorder %s22_s16, %s22_s16 }
   0x3   :  { %p896_p0 = scmp.ne.s32.totalorder %s22_s16, %s895_s17  ;;  %p901_p2 = scmp.lt.s32.totalorder %s895_s17, %s895_s17 }
   0x5   :  { %p902_p3 = por %p901_p2, %p900_p1 }
   0x7   :  { %p903_p4 = pnand %p902_p3, %p896_p0 }
   0x9   :  { %906 = shalt.err (!%p903_p4)
}
   0xa   :  { %s910_s18 = smov 256   ;;  %s911_s19 = smov 16  }
   0xb   :  { %27 = dma.hbm_to_vmem [thread:$0]  %s998_s3, 28160, %s22_s16, [#allocation3], %s910_s18, %s910_s18, %s911_s19  }
   0xc   :  { %907 = dma.done.wait [#allocation3], 28160  }
   0xd   :  { %908 = vsyncadd [#allocation3], 4294939136  ;;  %v912_v0 = vmov 0.0   ;;  %v49_v1 = vld [vmem:[#allocation2 + $0x78] sm:$0xff]  ;;  %v48_v2 = vld [vmem:[#allocation2 + $0x70] sm:$0xff]  ;;  %vm50_vm0 = vcmask 130048  }
   0xe   :  { %118 = vmatprep.mubr.f32.mxu1 %v912_v0  ;;  %v47_v3 = vld [vmem:[#allocation2 + $0x68] sm:$0xff]  ;;  %82 = vmatprep.subr.mxu1 %v49_v1  ;;  %v46_v4 = vld [vmem:[#allocation2 + $0x60] sm:$0xff]  ;;  %v45_v6 = vld [vmem:[#allocation2 + $0x58] sm:$0xff]  ;;  %vm125_vm1 = vcmask 392192   ;;  %vm913_vm2 = vmmov 0   ;;  %vm474_vm3 = vcmask 1043456  }
   0xf   :  { %83 = vmatpush1.msra.mxu1 %v48_v2  ;;  %v33_v5 = vld [vmem:[%s997_s2] sm:$0xff]  ;;  %v44_v7 = vld [vmem:[#allocation2 + $0x50] sm:$0xff]  ;;  %v43_v8 = vld [vmem:[#allocation2 + $0x48] sm:$0xff]  ;;  %vm470_vm4 = vcmask 31744  }
  0x10   :  { %84 = vmatprep.subr.mxu1 %v47_v3  ;;  %v42_v9 = vld [vmem:[#allocation2 + $0x40] sm:$0xff]  ;;  %v41_v10 = vld [vmem:[#allocation2 + $0x38] sm:$0xff]  ;;  %v248_v11 = vld [vmem:[#allocation2 + $0x188] sm:$0xff] }
  0x11   :  { %85 = vmatpush1.msra.mxu1 %v46_v4  ;;  %v247_v12 = vld [vmem:[#allocation2 + $0x180] sm:$0xff]  ;;  %v246_v13 = vld [vmem:[#allocation2 + $0x178] sm:$0xff]  ;;  %v40_v14 = vld [vmem:[#allocation2 + $0x30] sm:$0xff]  ;;  %294 = vmatprep.subr.mxu0 %v248_v11 }
  0x12   :  { %732 = vmatmul.mubr.msk.f32.vlgmr.msra.gmra.mxu1 %vm50_vm0, %v33_v5  ;;  %149 = vmatprep.subr.mxu1 %v45_v6  ;;  %v245_v15 = vld [vmem:[#allocation2 + $0x170] sm:$0xff]  ;;  %v39_v16 = vld [vmem:[#allocation2 + $0x28] sm:$0xff]  ;;  %v38_v18 = vld [vmem:[#allocation2 + $0x20] sm:$0xff] }
  0x13   :  { %150 = vmatpush1.msra.mxu1 %v44_v7  ;;  %193 = vmatprep.mubr.f32.mxu1 %v912_v0  ;;  %v244_v17 = vld [vmem:[#allocation2 + $0x168] sm:$0xff]  ;;  %v243_v19 = vld [vmem:[#allocation2 + $0x160] sm:$0xff]  ;;  %v37_v20 = vld [vmem:[#allocation2 + $0x18] sm:$0xff] }
  0x14   :  { %151 = vmatprep.subr.mxu1 %v43_v8  ;;  %295 = vmatpush1.msra.mxu0 %v247_v12  ;;  %v242_v21 = vld [vmem:[#allocation2 + $0x158] sm:$0xff]  ;;  %v36_v22 = vld [vmem:[#allocation2 + $0x10] sm:$0xff]  ;;  %v35_v24 = vld [vmem:[#allocation2 + $0x8] sm:$0xff] }
  0x15   :  { %152 = vmatpush1.msra.mxu1 %v42_v9  ;;  %296 = vmatprep.subr.mxu0 %v246_v13  ;;  %v241_v23 = vld [vmem:[#allocation2 + $0x150] sm:$0xff]  ;;  %v240_v25 = vld [vmem:[#allocation2 + $0x148] sm:$0xff]  ;;  %v34_v26 = vld [vmem:[#allocation2] sm:$0xff] }
  0x16   :  { %153 = vmatprep.subr.mxu1 %v41_v10  ;;  %297 = vmatpush1.msra.mxu0 %v245_v15  ;;  %v239_v27 = vld [vmem:[#allocation2 + $0x140] sm:$0xff]  ;;  %v238_v29 = vld [vmem:[#allocation2 + $0x138] sm:$0xff]  ;;  %v237_v30 = vld [vmem:[#allocation2 + $0x130] sm:$0xff] }
  0x17   :  { %154 = vmatpush1.msra.mxu1 %v40_v14  ;;  %298 = vmatprep.subr.mxu0 %v244_v17  ;;  %v32_v28 = vld [vmem:[%s996_s1] sm:$0xff]  ;;  %v236_v31 = vld [vmem:[#allocation2 + $0x128] sm:$0xff]  ;;  %v234_v33 = vld [vmem:[#allocation2 + $0x118] sm:$0xff] }
  0x18   :  { %155 = vmatprep.subr.mxu1 %v39_v16  ;;  %299 = vmatpush1.msra.mxu0 %v243_v19  ;;  %v235_v32 = vld [vmem:[#allocation2 + $0x120] sm:$0xff]  ;;  %v233_v34 = vld [vmem:[#allocation2 + $0x110] sm:$0xff]  ;;  %v232_v35 = vld [vmem:[#allocation2 + $0x108] sm:$0xff] }
  0x19   :  { %156 = vmatpush1.msra.mxu1 %v38_v18  ;;  %300 = vmatprep.subr.mxu0 %v242_v21  ;;  %v231_v36 = vld [vmem:[#allocation2 + $0x100] sm:$0xff]  ;;  %v230_v37 = vld [vmem:[#allocation2 + $0xf8] sm:$0xff]  ;;  %v229_v38 = vld [vmem:[#allocation2 + $0xf0] sm:$0xff] }
  0x1a   :  { %157 = vmatprep.subr.mxu1 %v37_v20  ;;  %301 = vmatpush1.msra.mxu0 %v241_v23  ;;  %v228_v39 = vld [vmem:[#allocation2 + $0xe8] sm:$0xff]  ;;  %v227_v40 = vld [vmem:[#allocation2 + $0xe0] sm:$0xff]  ;;  %v226_v41 = vld [vmem:[#allocation2 + $0xd8] sm:$0xff] }
  0x1b   :  { %158 = vmatpush1.msra.mxu1 %v36_v22  ;;  %302 = vmatprep.subr.mxu0 %v240_v25  ;;  %v225_v42 = vld [vmem:[#allocation2 + $0xd0] sm:$0xff]  ;;  %v224_v43 = vld [vmem:[#allocation2 + $0xc8] sm:$0xff]  ;;  %v223_v44 = vld [vmem:[#allocation2 + $0xc0] sm:$0xff] }
  0x1c   :  { %159 = vmatprep.subr.mxu1 %v35_v24  ;;  %303 = vmatpush1.msra.mxu0 %v239_v27  ;;  %v222_v45 = vld [vmem:[#allocation2 + $0xb8] sm:$0xff]  ;;  %v221_v46 = vld [vmem:[#allocation2 + $0xb0] sm:$0xff]  ;;  %v220_v47 = vld [vmem:[#allocation2 + $0xa8] sm:$0xff] }
  0x1d   :  { %160 = vmatpush1.msra.mxu1 %v34_v26  ;;  %304 = vmatprep.subr.mxu0 %v238_v29  ;;  %v219_v48 = vld [vmem:[#allocation2 + $0xa0] sm:$0xff]  ;;  %v218_v49 = vld [vmem:[#allocation2 + $0x98] sm:$0xff]  ;;  %v217_v50 = vld [vmem:[#allocation2 + $0x90] sm:$0xff] }
  0x1e   :  { %733 = vmatmul.mubr.msk.f32.vlgmr.msra.gmra.mxu1 %vm125_vm1, %v32_v28  ;;  %305 = vmatpush1.msra.mxu0 %v237_v30  ;;  %v280_v51 = vld [vmem:[#allocation2 + $0x288] sm:$0xff]  ;;  %v279_v52 = vld [vmem:[#allocation2 + $0x280] sm:$0xff]  ;;  %v278_v53 = vld [vmem:[#allocation2 + $0x278] sm:$0xff] }
  0x1f   :  { %306 = vmatprep.subr.mxu0 %v236_v31  ;;  %v277_v54 = vld [vmem:[#allocation2 + $0x270] sm:$0xff]  ;;  %v276_v55 = vld [vmem:[#allocation2 + $0x268] sm:$0xff]  ;;  %v275_v56 = vld [vmem:[#allocation2 + $0x260] sm:$0xff] }
  0x20   :  { %307 = vmatpush1.msra.mxu0 %v235_v32  ;;  %v274_v57 = vld [vmem:[#allocation2 + $0x258] sm:$0xff]  ;;  %v273_v58 = vld [vmem:[#allocation2 + $0x250] sm:$0xff]  ;;  %v272_v59 = vld [vmem:[#allocation2 + $0x248] sm:$0xff] }
  0x21   :  { %308 = vmatprep.subr.mxu0 %v234_v33  ;;  %v271_v60 = vld [vmem:[#allocation2 + $0x240] sm:$0xff]  ;;  %v270_v61 = vld [vmem:[#allocation2 + $0x238] sm:$0xff]  ;;  %v269_v62 = vld [vmem:[#allocation2 + $0x230] sm:$0xff] }
  0x22   :  { %309 = vmatpush1.msra.mxu0 %v233_v34  ;;  %v268_v63 = vld [vmem:[#allocation2 + $0x228] sm:$0xff]  ;;  %v267_v1 = vld [vmem:[#allocation2 + $0x220] sm:$0xff]  ;;  %v266_v2 = vld [vmem:[#allocation2 + $0x218] sm:$0xff] }
  0x23   :  { %310 = vmatprep.subr.mxu0 %v232_v35  ;;  %v265_v3 = vld [vmem:[#allocation2 + $0x210] sm:$0xff]  ;;  %v264_v4 = vld [vmem:[#allocation2 + $0x208] sm:$0xff]  ;;  %v263_v5 = vld [vmem:[#allocation2 + $0x200] sm:$0xff] }
  0x24   :  { %311 = vmatpush1.msra.mxu0 %v231_v36  ;;  %v262_v6 = vld [vmem:[#allocation2 + $0x1f8] sm:$0xff]  ;;  %v261_v7 = vld [vmem:[#allocation2 + $0x1f0] sm:$0xff]  ;;  %v260_v8 = vld [vmem:[#allocation2 + $0x1e8] sm:$0xff] }
  0x25   :  { %312 = vmatprep.subr.mxu0 %v230_v37  ;;  %v259_v9 = vld [vmem:[#allocation2 + $0x1e0] sm:$0xff]  ;;  %v258_v10 = vld [vmem:[#allocation2 + $0x1d8] sm:$0xff]  ;;  %v257_v11 = vld [vmem:[#allocation2 + $0x1d0] sm:$0xff] }
  0x26   :  { %313 = vmatpush1.msra.mxu0 %v229_v38  ;;  %v256_v12 = vld [vmem:[#allocation2 + $0x1c8] sm:$0xff]  ;;  %v255_v13 = vld [vmem:[#allocation2 + $0x1c0] sm:$0xff]  ;;  %v254_v14 = vld [vmem:[#allocation2 + $0x1b8] sm:$0xff] }
  0x27   :  { %314 = vmatprep.subr.mxu0 %v228_v39  ;;  %v253_v15 = vld [vmem:[#allocation2 + $0x1b0] sm:$0xff]  ;;  %v252_v16 = vld [vmem:[#allocation2 + $0x1a8] sm:$0xff]  ;;  %v251_v17 = vld [vmem:[#allocation2 + $0x1a0] sm:$0xff] }
  0x28   :  { %315 = vmatpush1.msra.mxu0 %v227_v40  ;;  %v250_v18 = vld [vmem:[#allocation2 + $0x198] sm:$0xff]  ;;  %v249_v19 = vld [vmem:[#allocation2 + $0x190] sm:$0xff]  ;;  %v399_v20 = vld [vmem:[#allocation2 + $0x4a0] sm:$0xff] }
  0x29   :  { %316 = vmatprep.subr.mxu0 %v226_v41  ;;  %v383_v21 = vld [vmem:[#allocation2 + $0x3a0] sm:$0xff]  ;;  %v398_v22 = vld [vmem:[#allocation2 + $0x490] sm:$0xff]  ;;  %736 = vmatprep.subr.mxu1 %v399_v20 }
  0x2a   :  { %317 = vmatpush1.msra.mxu0 %v225_v42  ;;  %v382_v23 = vld [vmem:[#allocation2 + $0x390] sm:$0xff]  ;;  %737 = vmatpush3.msra.mxu1 %v383_v21  ;;  %v397_v24 = vld [vmem:[#allocation2 + $0x480] sm:$0xff] }
  0x2b   :  { %318 = vmatprep.subr.mxu0 %v224_v43  ;;  %738 = vmatprep.subr.mxu1 %v398_v22  ;;  %v381_v25 = vld [vmem:[#allocation2 + $0x380] sm:$0xff]  ;;  %v396_v26 = vld [vmem:[#allocation2 + $0x470] sm:$0xff] }
  0x2c   :  { %319 = vmatpush1.msra.mxu0 %v223_v44  ;;  %739 = vmatpush3.msra.mxu1 %v382_v23  ;;  %v380_v27 = vld [vmem:[#allocation2 + $0x370] sm:$0xff]  ;;  %v395_v28 = vld [vmem:[#allocation2 + $0x460] sm:$0xff] }
  0x2d   :  { %320 = vmatprep.subr.mxu0 %v222_v45  ;;  %740 = vmatprep.subr.mxu1 %v397_v24  ;;  %v379_v29 = vld [vmem:[#allocation2 + $0x360] sm:$0xff]  ;;  %v394_v30 = vld [vmem:[#allocation2 + $0x450] sm:$0xff]  ;;  %v203_v45 = vlaneseq }
  0x2e   :  { %321 = vmatpush1.msra.mxu0 %v221_v46  ;;  %741 = vmatpush3.msra.mxu1 %v381_v25  ;;  %v378_v31 = vld [vmem:[#allocation2 + $0x350] sm:$0xff]  ;;  %v393_v32 = vld [vmem:[#allocation2 + $0x440] sm:$0xff] }
  0x2f   :  { %322 = vmatprep.subr.mxu0 %v220_v47  ;;  %742 = vmatprep.subr.mxu1 %v396_v26  ;;  %v377_v33 = vld [vmem:[#allocation2 + $0x340] sm:$0xff]  ;;  %v392_v34 = vld [vmem:[#allocation2 + $0x430] sm:$0xff]  ;;  %v204_v46 = vshrl.u32 %v203_v45, 7 }
  0x30   :  { %323 = vmatpush1.msra.mxu0 %v219_v48  ;;  %743 = vmatpush3.msra.mxu1 %v380_v27  ;;  %v376_v35 = vld [vmem:[#allocation2 + $0x330] sm:$0xff]  ;;  %v391_v36 = vld [vmem:[#allocation2 + $0x420] sm:$0xff] }
  0x31   :  { %324 = vmatprep.subr.mxu0 %v218_v49  ;;  %744 = vmatprep.subr.mxu1 %v395_v28  ;;  %v375_v37 = vld [vmem:[#allocation2 + $0x320] sm:$0xff]  ;;  %v390_v38 = vld [vmem:[#allocation2 + $0x410] sm:$0xff]  ;;  %v205_v48 = vsub.s32 0, %v204_v46 }
  0x32   :  { %325 = vmatpush1.msra.mxu0 %v217_v50  ;;  %745 = vmatpush3.msra.mxu1 %v379_v29  ;;  %v374_v39 = vld [vmem:[#allocation2 + $0x310] sm:$0xff]  ;;  %v389_v40 = vld [vmem:[#allocation2 + $0x400] sm:$0xff]  ;;  %v209_v50 = vsub.s32 1, %v204_v46 }
  0x33   :  { %326 = vmatprep.subr.mxu0 %v280_v51  ;;  %746 = vmatprep.subr.mxu1 %v394_v30  ;;  %v373_v41 = vld [vmem:[#allocation2 + $0x300] sm:$0xff]  ;;  %v388_v42 = vld [vmem:[#allocation2 + $0x3f0] sm:$0xff] }
  0x34   :  { %327 = vmatpush2.msra.mxu0 %v279_v52  ;;  %747 = vmatpush3.msra.mxu1 %v378_v31  ;;  %v372_v43 = vld [vmem:[#allocation2 + $0x2f0] sm:$0xff]  ;;  %v387_v44 = vld [vmem:[#allocation2 + $0x3e0] sm:$0xff] }
  0x35   :  { %328 = vmatprep.subr.mxu0 %v278_v53  ;;  %748 = vmatprep.subr.mxu1 %v393_v32  ;;  %v201_v49 = vld [vmem:[#allocation2 + $0x80] ss:$8 sm:$0x3]  ;;  %v562_v21 = vld [vmem:[#allocation2 + $0x570] sm:$0xff] }
  0x36   :  { %329 = vmatpush2.msra.mxu0 %v277_v54  ;;  %749 = vmatpush3.msra.mxu1 %v377_v33  ;;  %v206_v53 = vrot.slane %v201_v49, %v205_v48  ;;  %v563_v20 = vld [vmem:[#allocation2 + $0x580] sm:$0xff]  ;;  %v560_v23 = vld [vmem:[#allocation2 + $0x550] sm:$0xff] }
  0x37   :  { %330 = vmatprep.subr.mxu0 %v276_v55  ;;  %750 = vmatprep.subr.mxu1 %v392_v34  ;;  %v210_v55 = vrot.slane %v201_v49, %v209_v50  ;;  %v561_v22 = vld [vmem:[#allocation2 + $0x560] sm:$0xff]  ;;  %v558_v25 = vld [vmem:[#allocation2 + $0x530] sm:$0xff] }
  0x38   :  { %331 = vmatpush2.msra.mxu0 %v275_v56  ;;  %751 = vmatpush3.msra.mxu1 %v376_v35  ;;  %v559_v24 = vld [vmem:[#allocation2 + $0x540] sm:$0xff]  ;;  %v556_v27 = vld [vmem:[#allocation2 + $0x510] sm:$0xff] }
  0x39   :  { %332 = vmatprep.subr.mxu0 %v274_v57  ;;  %752 = vmatprep.subr.mxu1 %v391_v36  ;;  %v557_v26 = vld [vmem:[#allocation2 + $0x520] sm:$0xff]  ;;  %v554_v29 = vld [vmem:[#allocation2 + $0x4f0] sm:$0xff] }
  0x3a   :  { %333 = vmatpush2.msra.mxu0 %v273_v58  ;;  %753 = vmatpush3.msra.mxu1 %v375_v37  ;;  %v555_v28 = vld [vmem:[#allocation2 + $0x500] sm:$0xff]  ;;  %v552_v31 = vld [vmem:[#allocation2 + $0x4d0] sm:$0xff] }
  0x3b   :  { %334 = vmatprep.subr.mxu0 %v272_v59  ;;  %754 = vmatprep.subr.mxu1 %v390_v38  ;;  %v553_v30 = vld [vmem:[#allocation2 + $0x4e0] sm:$0xff]  ;;  %v653_v34 = vld [vmem:[#allocation2 + $0x6b0] sm:$0xff] }
  0x3c   :  { %335 = vmatpush2.msra.mxu0 %v271_v60  ;;  %755 = vmatpush3.msra.mxu1 %v374_v39  ;;  %v551_v32 = vld [vmem:[#allocation2 + $0x4c0] sm:$0xff]  ;;  %v651_v36 = vld [vmem:[#allocation2 + $0x690] sm:$0xff] }
  0x3d   :  { %336 = vmatprep.subr.mxu0 %v270_v61  ;;  %756 = vmatprep.subr.mxu1 %v389_v40  ;;  %v654_v33 = vld [vmem:[#allocation2 + $0x6c0] sm:$0xff]  ;;  %v649_v38 = vld [vmem:[#allocation2 + $0x670] sm:$0xff] }
  0x3e   :  { %337 = vmatpush2.msra.mxu0 %v269_v62  ;;  %757 = vmatpush3.msra.mxu1 %v373_v41  ;;  %v371_v62 = vld [vmem:[#allocation2 + $0x2e0] sm:$0xff]  ;;  %v647_v40 = vld [vmem:[#allocation2 + $0x650] sm:$0xff] }
  0x3f   :  { %338 = vmatprep.subr.mxu0 %v268_v63  ;;  %758 = vmatprep.subr.mxu1 %v388_v42  ;;  %v386_v63 = vld [vmem:[#allocation2 + $0x3d0] sm:$0xff]  ;;  %v652_v35 = vld [vmem:[#allocation2 + $0x6a0] sm:$0xff] }
  0x40   :  { %339 = vmatpush2.msra.mxu0 %v267_v1  ;;  %759 = vmatpush3.msra.mxu1 %v372_v43  ;;  %v370_v1 = vld [vmem:[#allocation2 + $0x2d0] sm:$0xff]  ;;  %v650_v37 = vld [vmem:[#allocation2 + $0x680] sm:$0xff] }
  0x41   :  { %340 = vmatprep.subr.mxu0 %v266_v2  ;;  %760 = vmatprep.subr.mxu1 %v387_v44  ;;  %v385_v2 = vld [vmem:[#allocation2 + $0x3c0] sm:$0xff]  ;;  %v645_v42 = vld [vmem:[#allocation2 + $0x630] sm:$0xff] }
  0x42   :  { %341 = vmatpush2.msra.mxu0 %v265_v3  ;;  %761 = vmatpush3.msra.mxu1 %v371_v62  ;;  %v369_v3 = vld [vmem:[#allocation2 + $0x2c0] sm:$0xff]  ;;  %v643_v44 = vld [vmem:[#allocation2 + $0x610] sm:$0xff] }
  0x43   :  { %342 = vmatprep.subr.mxu0 %v264_v4  ;;  %762 = vmatprep.subr.mxu1 %v386_v63  ;;  %v384_v4 = vld [vmem:[#allocation2 + $0x3b0] sm:$0xff]  ;;  %v648_v39 = vld [vmem:[#allocation2 + $0x660] sm:$0xff] }
  0x44   :  { %343 = vmatpush2.msra.mxu0 %v263_v5  ;;  %763 = vmatpush3.msra.mxu1 %v370_v1  ;;  %v368_v5 = vld [vmem:[#allocation2 + $0x2b0] sm:$0xff]  ;;  %v646_v41 = vld [vmem:[#allocation2 + $0x640] sm:$0xff] }
  0x45   :  { %344 = vmatprep.subr.mxu0 %v262_v6  ;;  %764 = vmatprep.subr.mxu1 %v385_v2  ;;  %v282_v6 = vld [vmem:[#allocation2 + $0x290] ss:$8 sm:$0x3]  ;;  %v644_v43 = vld [vmem:[#allocation2 + $0x620] sm:$0xff] }
  0x46   :  { %345 = vmatpush2.msra.mxu0 %v261_v7  ;;  %765 = vmatpush3.msra.mxu1 %v369_v3  ;;  %v287_v7 = vrot.slane %v282_v6, %v205_v48  ;;  %v642_v45 = vld [vmem:[#allocation2 + $0x600] sm:$0xff]  ;;  %v655_v63 = vld [vmem:[#allocation2 + $0x6d0] ss:$0 sm:$0xff] }
  0x47   :  { %346 = vmatprep.subr.mxu0 %v260_v8  ;;  %766 = vmatprep.subr.mxu1 %v384_v4  ;;  %v291_v8 = vrot.slane %v282_v6, %v209_v50  ;;  %v548_v50 = vld [vmem:[#allocation2 + $0x4b0] ss:$0 sm:$0xff] }
  0x48   :  { %347 = vmatpush2.msra.mxu0 %v259_v9  ;;  %767 = vmatpush3.msra.mxu1 %v368_v5 }
  0x49   :  { %348 = vmatprep.subr.mxu0 %v258_v10  ;;  %807 = vmatprep.subr.mxu1 %v912_v0 }
  0x4a   :  { %349 = vmatpush2.msra.mxu0 %v257_v11 }
  0x4b   :  { %350 = vmatprep.subr.mxu0 %v256_v12 }
  0x4c   :  { %351 = vmatpush2.msra.mxu0 %v255_v13 }
  0x4d   :  { %352 = vmatprep.subr.mxu0 %v254_v14 }
  0x4e   :  { %353 = vmatpush2.msra.mxu0 %v253_v15  ;;  %v367_v15 = vld [vmem:[#allocation2 + $0x2a0] sm:$0xf] }
  0x4f   :  { %354 = vmatprep.subr.mxu0 %v252_v16  ;;  %v31_v16 = vld [vmem:[%s995_s0] sm:$0xff] }
  0x50   :  { %355 = vmatpush2.msra.mxu0 %v251_v17  ;;  %v566_v17 = vld [vmem:[#allocation2 + $0x5b0] sm:$0xff] }
  0x51   :  { %356 = vmatprep.subr.mxu0 %v250_v18  ;;  %v565_v18 = vld [vmem:[#allocation2 + $0x5a0] sm:$0xff] }
  0x52   :  { %357 = vmatpush2.msra.mxu0 %v249_v19  ;;  %v564_v19 = vld [vmem:[#allocation2 + $0x590] sm:$0xff] }
  0x53   :  { %847 = vmatprep.subr.mxu0 %v912_v0 }
  0xd2   :  { %v120_v47 = vpop.f32.mrf.mxu1 }
  0xd4   :  { %v122_v51 = vpop.f32.mrf.mxu1 }
  0xde   :  { %v195_v52 = vpop.f32.mrf.mxu1 }
  0xdf   :  { %v196_v54 = vadd.f32 %v195_v52, %v120_v47 }
  0xe0   :  { %v197_v56 = vpop.f32.mrf.mxu1 }
  0xe1   :  { %v198_v57 = vadd.f32 %v197_v56, %v122_v51  ;;  %v213_v58 = vadd.f32 %v206_v53, %v196_v54  ;;  %v640_v56 = vld [vmem:[#allocation2 + $0x5e0] sm:$0xff] }
  0xe3   :  { %v214_v59 = vadd.f32 %v210_v55, %v198_v57  ;;  %v215_v61 = vmax.f32 %v213_v58, 0.0  ;;  %v641_v55 = vld [vmem:[#allocation2 + $0x5f0] sm:$0xff]  ;;  %v567_v58 = vld [vmem:[#allocation2 + $0x5c0] ss:$0 sm:$0xff] }
  0xe4   :  { %v639_v57 = vld [vmem:[#allocation2 + $0x5d0] sm:$0xff] }
  0xe5   :  { %v216_v60 = vmax.f32 %v214_v59, 0.0 }
  0xe7   :  { %358 = vmatprep.mubr.f32.mxu0 %v216_v60 }
  0xe8   :  { %359 = vmatmul.mubr.f32.vlgmr.msra.gmra.mxu0 %v215_v61 }
  0xe9   :  { %879 = vmatprep.mubr.msk.f32.mxu0 %vm913_vm2, %v912_v0  ;;  %848 = vmatpush3.msra.mxu0 %v654_v33 }
  0xea   :  { %849 = vmatprep.subr.mxu0 %v912_v0 }
  0xeb   :  { %850 = vmatpush3.msra.mxu0 %v653_v34 }
  0xec   :  { %851 = vmatprep.subr.mxu0 %v912_v0 }
  0xed   :  { %852 = vmatpush3.msra.mxu0 %v652_v35 }
  0xee   :  { %853 = vmatprep.subr.mxu0 %v912_v0 }
  0xef   :  { %854 = vmatpush3.msra.mxu0 %v651_v36 }
  0xf0   :  { %855 = vmatprep.subr.mxu0 %v912_v0 }
  0xf1   :  { %856 = vmatpush3.msra.mxu0 %v650_v37 }
  0xf2   :  { %857 = vmatprep.subr.mxu0 %v912_v0 }
  0xf3   :  { %858 = vmatpush3.msra.mxu0 %v649_v38 }
  0xf4   :  { %859 = vmatprep.subr.mxu0 %v912_v0 }
  0xf5   :  { %860 = vmatpush3.msra.mxu0 %v648_v39 }
  0xf6   :  { %861 = vmatprep.subr.mxu0 %v912_v0 }
  0xf7   :  { %862 = vmatpush3.msra.mxu0 %v647_v40 }
  0xf8   :  { %863 = vmatprep.subr.mxu0 %v912_v0 }
  0xf9   :  { %864 = vmatpush3.msra.mxu0 %v646_v41 }
  0xfa   :  { %865 = vmatprep.subr.mxu0 %v912_v0 }
  0xfb   :  { %866 = vmatpush3.msra.mxu0 %v645_v42 }
  0xfc   :  { %867 = vmatprep.subr.mxu0 %v912_v0 }
  0xfd   :  { %868 = vmatpush3.msra.mxu0 %v644_v43 }
  0xfe   :  { %869 = vmatprep.subr.mxu0 %v912_v0 }
  0xff   :  { %870 = vmatpush3.msra.mxu0 %v643_v44 }
 0x100   :  { %871 = vmatprep.subr.mxu0 %v912_v0 }
 0x101   :  { %872 = vmatpush3.msra.mxu0 %v642_v45 }
 0x102   :  { %873 = vmatprep.subr.mxu0 %v912_v0 }
 0x103   :  { %874 = vmatpush3.msra.mxu0 %v641_v55 }
 0x104   :  { %875 = vmatprep.subr.mxu0 %v912_v0 }
 0x105   :  { %876 = vmatpush3.msra.mxu0 %v640_v56 }
 0x106   :  { %877 = vmatprep.subr.mxu0 %v912_v0 }
 0x107   :  { %878 = vmatpush3.msra.mxu0 %v639_v57 }
 0x1a8   :  { %v360_v9 = vpop.f32.mrf.mxu0 }
 0x1a9   :  { %v361_v10 = vadd.f32 %v360_v9, %v287_v7 }
 0x1aa   :  { %v362_v11 = vpop.f32.mrf.mxu0 }
 0x1ab   :  { %v363_v12 = vadd.f32 %v362_v11, %v291_v8  ;;  %v365_v14 = vmax.f32 %v361_v10, 0.0 }
 0x1ad   :  { %v366_v13 = vmax.f32 %v363_v12, 0.0 }
 0x1af   :  { %464 = vmatprep.mubr.f32.mxu1 %v366_v13 }
 0x1b0   :  { %465 = vmatmul.mubr.f32.vlgmr.msra.gmra.mxu1 %v365_v14 }
 0x1b1   :  { %808 = vmatpush3.msk.msra.mxu1 %vm474_vm3, %v367_v15  ;;  %809 = vmatprep.mubr.msk.f32.mxu1 %vm913_vm2, %v912_v0 }
 0x1b2   :  { %812 = vmatprep.subr.mxu1 %v912_v0 }
 0x1b4   :  { %810 = vmatmul.mubr.msk.f32.vlgmr.msra.gmra.mxu1 %vm470_vm4, %v31_v16 }
 0x1b5   :  { %813 = vmatpush3.msra.mxu1 %v566_v17  ;;  %844 = vmatprep.mubr.msk.f32.mxu1 %vm913_vm2, %v912_v0 }
 0x1b6   :  { %814 = vmatprep.subr.mxu1 %v912_v0 }
 0x1b7   :  { %815 = vmatpush3.msra.mxu1 %v565_v18 }
 0x1b8   :  { %816 = vmatprep.subr.mxu1 %v912_v0 }
 0x1b9   :  { %817 = vmatpush3.msra.mxu1 %v564_v19 }
 0x1ba   :  { %818 = vmatprep.subr.mxu1 %v912_v0 }
 0x1bb   :  { %819 = vmatpush3.msra.mxu1 %v563_v20 }
 0x1bc   :  { %820 = vmatprep.subr.mxu1 %v912_v0 }
 0x1bd   :  { %821 = vmatpush3.msra.mxu1 %v562_v21 }
 0x1be   :  { %822 = vmatprep.subr.mxu1 %v912_v0 }
 0x1bf   :  { %823 = vmatpush3.msra.mxu1 %v561_v22 }
 0x1c0   :  { %824 = vmatprep.subr.mxu1 %v912_v0 }
 0x1c1   :  { %825 = vmatpush3.msra.mxu1 %v560_v23 }
 0x1c2   :  { %826 = vmatprep.subr.mxu1 %v912_v0 }
 0x1c3   :  { %827 = vmatpush3.msra.mxu1 %v559_v24 }
 0x1c4   :  { %828 = vmatprep.subr.mxu1 %v912_v0 }
 0x1c5   :  { %829 = vmatpush3.msra.mxu1 %v558_v25 }
 0x1c6   :  { %830 = vmatprep.subr.mxu1 %v912_v0 }
 0x1c7   :  { %831 = vmatpush3.msra.mxu1 %v557_v26 }
 0x1c8   :  { %832 = vmatprep.subr.mxu1 %v912_v0 }
 0x1c9   :  { %833 = vmatpush3.msra.mxu1 %v556_v27 }
 0x1ca   :  { %834 = vmatprep.subr.mxu1 %v912_v0 }
 0x1cb   :  { %835 = vmatpush3.msra.mxu1 %v555_v28 }
 0x1cc   :  { %836 = vmatprep.subr.mxu1 %v912_v0 }
 0x1cd   :  { %837 = vmatpush3.msra.mxu1 %v554_v29 }
 0x1ce   :  { %838 = vmatprep.subr.mxu1 %v912_v0 }
 0x1cf   :  { %839 = vmatpush3.msra.mxu1 %v553_v30 }
 0x1d0   :  { %840 = vmatprep.subr.mxu1 %v912_v0 }
 0x1d1   :  { %841 = vmatpush3.msra.mxu1 %v552_v31 }
 0x1d2   :  { %842 = vmatprep.subr.mxu1 %v912_v0 }
 0x1d3   :  { %843 = vmatpush3.msra.mxu1 %v551_v32 }
 0x270   :  { %v768_v46 = vpop.f32.mrf.mxu1 }
 0x272   :  { %v769_v47 = vpop.f32.mrf.mxu1 }
 0x273   :  { %v770_v48 = vadd.f32 %v769_v47, %v768_v46 }
 0x274   :  { %v544_v49 = vpop.f32.mrf.mxu1 }
 0x275   :  { %v545_v51 = vadd.f32 %v770_v48, %v544_v49 }
 0x276   :  { %v811_v52 = vpop.f32.mrf.mxu1 }
 0x277   :  { %v549_v53 = vadd.f32 %v548_v50, %v545_v51 }
 0x279   :  { %v550_v54 = vmax.f32 %v549_v53, 0.0 }
 0x27b   :  { %845 = vmatmul.mubr.f32.vlgmr.msra.gmra.mxu1 %v550_v54 }
 0x33b   :  { %v634_v59 = vpop.f32.mrf.mxu1 }
 0x33c   :  { %v635_v60 = vadd.f32 %v634_v59, %v567_v58 }
 0x33d   :  { %v846_v61 = vpop.f32.mrf.mxu1 }
 0x33e   :  { %v638_v62 = vmax.f32 %v635_v60, 0.0 }
 0x340   :  { %880 = vmatmul.mubr.f32.vlgmr.msra.gmra.mxu0 %v638_v62 }
 0x400   :  { %v722_v1 = vpop.f32.mrf.mxu0 }
 0x401   :  { %v723_v2 = vadd.f32 %v722_v1, %v655_v63 }
 0x402   :  { %v881_v3 = vpop.f32.mrf.mxu0 }
 0x403   :  { %726 = vst [vmem:[%s999_s4] sm:$0xff] %v723_v2 }
 0x404   :  { %731 = vsyncpa [#allocation3], 1 }

</bundles_post_ra>
